<compile_context>
chip_gen: v5e
topology: v5e:2x2
jax: 0.10.0
libtpu: 0.0.40
codegen_flags: <defaults>
</compile_context>

<pallas_src>
import math

import jax
import jax.numpy as jnp
from jax.experimental import pallas as pl
from jax.experimental.pallas import tpu as pltpu

LN_EPS = 1e-5  # PyTorch nn.LayerNorm default eps


def _round_up(n, m):
    return ((n + m - 1) // m) * m


def _pick_batch_tile(batch, seq, target_rows=256):
    """Largest divisor of `batch` with batch_tile*seq <= target MXU M rows."""
    best = 1
    for d in range(1, batch + 1):
        if batch % d == 0 and d * seq <= max(target_rows, seq):
            best = d
    return best


def _erf(x):
    # Abramowitz & Stegun 7.1.26 polynomial (|err| < 1.5e-7). exp -> EUP,
    # reciprocal -> EUP (approx), so the VALU only sees the polynomial FMAs.
    a1, a2, a3, a4, a5 = 0.254829592, -0.284496736, 1.421413741, -1.453152027, 1.061405429
    p = 0.3275911
    ax = jnp.abs(x)
    t = pl.reciprocal(1.0 + p * ax, approx=True)
    poly = ((((a5 * t + a4) * t + a3) * t + a2) * t + a1) * t
    y = 1.0 - poly * jnp.exp(-ax * ax)
    return jnp.where(x >= 0, y, -y)


def _gelu_exact(x):
    # nn.GELU() default is the exact (erf-based) GELU; computed in f32.
    return 0.5 * x * (1.0 + _erf(x * (1.0 / math.sqrt(2.0))))


def _layernorm(x, gamma, beta, inv_d):
    # Single-pass LN (f32 stats). Padded feature columns are zero and gamma/beta
    # are zero-padded, so padded outputs stay exactly zero. inv_d uses the REAL
    # feature count, so padding does not perturb mean/var.
    s1 = jnp.sum(x, axis=-1, keepdims=True)
    s2 = jnp.sum(x * x, axis=-1, keepdims=True)
    mu = s1 * inv_d
    var = jnp.maximum(s2 * inv_d - mu * mu, 0.0)
    return (x - mu) * jax.lax.rsqrt(var + LN_EPS) * gamma + beta


_PARAM_ORDER = ("ln_g", "ln_b", "w_in", "b_in", "sgu_g", "sgu_b",
                "w_sgu", "b_sgu", "w_out", "b_out")


def stack_gmlp_params(params, d_pad, dh_pad):
    """Stack per-layer params along depth, zero-pad features to 128 multiples,
    fuse proj_in res/gate halves into one lane-aligned weight, bf16 matmul
    weights (f32 accumulation in-kernel)."""
    d = params[0]["w_in"].shape[0]
    dh = params[0]["w_in"].shape[1] // 2

    def pad2(a, rows, cols):
        return jnp.pad(a, ((0, rows - a.shape[0]), (0, cols - a.shape[1])))

    per_layer = []
    for p in params:
        w_res = pad2(p["w_in"][:, :dh], d_pad, dh_pad)
        w_gate = pad2(p["w_in"][:, dh:], d_pad, dh_pad)
        b_res = pad2(p["b_in"][:, :dh], 1, dh_pad)
        b_gate = pad2(p["b_in"][:, dh:], 1, dh_pad)
        per_layer.append(dict(
            ln_g=pad2(p["ln_g"], 1, d_pad),                       # (1, Dp)  f32
            ln_b=pad2(p["ln_b"], 1, d_pad),
            w_in=jnp.concatenate([w_res, w_gate], 1).astype(jnp.bfloat16),  # (Dp, 2DHp)
            b_in=jnp.concatenate([b_res, b_gate], 1),             # (1, 2DHp) f32
            sgu_g=pad2(p["sgu_g"], 1, dh_pad),                    # (1, DHp) f32
            sgu_b=pad2(p["sgu_b"], 1, dh_pad),
            w_sgu=p["w_sgu"].astype(jnp.bfloat16),                # (S, S)   bf16
            b_sgu=p["b_sgu"],                                     # (S, 1)   f32
            w_out=pad2(p["w_out"], dh_pad, d_pad).astype(jnp.bfloat16),  # (DHp, Dp)
            b_out=pad2(p["b_out"], 1, d_pad),                     # (1, Dp)  f32
        ))
    return {k: jnp.stack([lp[k] for lp in per_layer], axis=0) for k in _PARAM_ORDER}


def gmlp_forward(x, params, *, batch_tile=None):
    """Full gMLP stack (to_embed = to_logits = Identity, eval mode) in one pallas_call."""
    B, S, D = x.shape
    L = len(params)
    DH = params[0]["w_in"].shape[1] // 2
    DP = _round_up(D, 128)
    DHP = _round_up(DH, 128)

    TB = batch_tile if batch_tile is not None else _pick_batch_tile(B, S)
    assert B % TB == 0, "batch_tile must divide batch"
    ROWS = TB * S

    sp = stack_gmlp_params(params, DP, DHP)
    x_p = jnp.pad(x, ((0, 0), (0, 0), (0, DP - D))) if DP != D else x

    inv_d = 1.0 / D
    inv_dh = 1.0 / DH

    def kernel(x_ref, ln_g_ref, ln_b_ref, w_in_ref, b_in_ref,
               sgu_g_ref, sgu_b_ref, w_sgu_ref, b_sgu_ref,
               w_out_ref, b_out_ref, o_ref, act_ref, gconv_ref):
        layer = pl.program_id(1)

        # Depth fusion: activation for this batch tile carried in f32 VMEM
        # scratch across the (innermost, "arbitrary") depth axis.
        @pl.when(layer == 0)
        def _():
            act_ref[...] = x_ref[...].reshape(ROWS, DP).astype(jnp.float32)

        xc = act_ref[...]                                        # (ROWS, DP) f32

        # PreNorm (f32, real-D statistics).
        xn = _layernorm(xc, ln_g_ref[0], ln_b_ref[0], inv_d)

        # proj_in: single fused matmul; DHP is a 128 multiple so the res/gate
        # split below is a lane-aligned view.
        h = jnp.dot(xn.astype(jnp.bfloat16), w_in_ref[0],
                    preferred_element_type=jnp.float32) + b_in_ref[0]
        h = _gelu_exact(h)                                       # (ROWS, 2*DHP)
        res = h[:, :DHP]
        gate = h[:, DHP:]

        # SpatialGatingUnit: LayerNorm over features, Conv1d(kernel=1) over the
        # sequence. Token mixing is per batch element, so a short unrolled loop
        # over the (static, small) batch tile.
        gate = _layernorm(gate, sgu_g_ref[0], sgu_b_ref[0], inv_dh)
        w_sgu = w_sgu_ref[0]                                     # (S, S) bf16
        b_sgu = b_sgu_ref[0]                                     # (S, 1) f32
        for b in range(TB):
            g_b = gate[b * S:(b + 1) * S, :].astype(jnp.bfloat16)
            gconv_ref[b * S:(b + 1) * S, :] = (
                jnp.dot(w_sgu, g_b, preferred_element_type=jnp.float32) + b_sgu)
        out = gconv_ref[...] * res                               # act = Identity

        # proj_out + residual back into the carried activation.
        y = jnp.dot(out.astype(jnp.bfloat16), w_out_ref[0],
                    preferred_element_type=jnp.float32) + b_out_ref[0]
        new_act = y + xc
        act_ref[...] = new_act

        # Lane-dense output store, once per batch tile.
        @pl.when(layer == pl.num_programs(1) - 1)
        def _():
            o_ref[...] = new_act.reshape(TB, S, DP).astype(o_ref.dtype)

    def layer_spec(arr):
        nd = arr.ndim
        # NOTE: pipeline_mode=pl.Buffered(3) is an option here if profiles show
        # exposed weight DMA at layer boundaries (skip on v7x if VMEM-tight).
        return pl.BlockSpec((1,) + tuple(arr.shape[1:]),
                            lambda b, l, _nd=nd: (l,) + (0,) * (_nd - 1))

    # Scheduling hint for XLA around the custom call.
    flops = 2 * B * L * S * (DP * 2 * DHP + S * DHP + DHP * DP)
    transcendentals = 2 * B * L * S * 2 * DHP                    # exp + rcp per GELU elem
    param_bytes = sum(int(v.size) * v.dtype.itemsize for v in sp.values())
    bytes_accessed = int(2 * B * S * DP * x_p.dtype.itemsize + (B // TB) * param_bytes)

    # Explicit VMEM budget: double-buffered activation/output blocks +
    # double-buffered per-layer weights + f32 scratch, with headroom.
    per_layer_param_bytes = param_bytes // max(L, 1)
    working_set = (4 * ROWS * DP * x_p.dtype.itemsize
                   + 2 * per_layer_param_bytes
                   + 4 * ROWS * (DP + DHP))
    vmem_limit = int(min(max(3 * working_set, 8 * 1024 * 1024), 64 * 1024 * 1024))

    out_p = pl.pallas_call(
        kernel,
        out_shape=jax.ShapeDtypeStruct((B, S, DP), x.dtype),
        grid=(B // TB, L),                                       # depth innermost
        in_specs=[pl.BlockSpec((TB, S, DP), lambda b, l: (b, 0, 0))]
                 + [layer_spec(sp[k]) for k in _PARAM_ORDER],
        out_specs=pl.BlockSpec((TB, S, DP), lambda b, l: (b, 0, 0)),
        scratch_shapes=[pltpu.VMEM((ROWS, DP), jnp.float32),     # carried residual stream
                        pltpu.VMEM((ROWS, DHP), jnp.float32)],   # SGU conv result
        compiler_params=pltpu.CompilerParams(
            dimension_semantics=("parallel", "arbitrary"),
            vmem_limit_bytes=vmem_limit),
        cost_estimate=pl.CostEstimate(
            flops=int(flops),
            transcendentals=int(transcendentals),
            bytes_accessed=bytes_accessed),
    )(x_p, *[sp[k] for k in _PARAM_ORDER])

    return out_p[:, :, :D] if DP != D else out_p


def init_gmlp_params(key, *, dim, depth, seq_len, ff_mult=4):
    """Deterministic synthetic init matching the module's parameter shapes (f32)."""
    dff = dim * ff_mult
    dh = dff // 2
    bound_in = 1.0 / math.sqrt(dim)     # nn.Linear default-style bound
    bound_out = 1.0 / math.sqrt(dh)
    eps = 1e-3 / seq_len                # SGU conv weight init: uniform(-eps, eps)
    params = []
    for _ in range(depth):
        key, k_win, k_bin, k_wsgu, k_wout, k_bout = jax.random.split(key, 6)
        params.append(dict(
            ln_g=jnp.ones((1, dim), jnp.float32),
            ln_b=jnp.zeros((1, dim), jnp.float32),
            w_in=jax.random.uniform(k_win, (dim, dff), jnp.float32, -bound_in, bound_in),
            b_in=jax.random.uniform(k_bin, (1, dff), jnp.float32, -bound_in, bound_in),
            sgu_g=jnp.ones((1, dh), jnp.float32),
            sgu_b=jnp.zeros((1, dh), jnp.float32),
            w_sgu=jax.random.uniform(k_wsgu, (seq_len, seq_len), jnp.float32, -eps, eps),
            b_sgu=jnp.ones((seq_len, 1), jnp.float32),    # conv bias init = 1.0
            w_out=jax.random.uniform(k_wout, (dh, dim), jnp.float32, -bound_out, bound_out),
            b_out=jax.random.uniform(k_bout, (1, dim), jnp.float32, -bound_out, bound_out),
        ))
    return params


def gmlp_forward_ref(x, params):
    """Pure-JAX f32 reference of the same forward pass (sanity check)."""
    def ln(v, g, b):
        mu = jnp.mean(v, axis=-1, keepdims=True)
        var = jnp.mean((v - mu) ** 2, axis=-1, keepdims=True)
        return (v - mu) * jax.lax.rsqrt(var + LN_EPS) * g + b

    for p in params:
        dh = p["w_in"].shape[1] // 2
        xn = ln(x, p["ln_g"][0], p["ln_b"][0])
        h = xn @ p["w_in"] + p["b_in"][0]
        h = jax.nn.gelu(h, approximate=False)
        res, gate = h[..., :dh], h[..., dh:]
        gate = ln(gate, p["sgu_g"][0], p["sgu_b"][0])
        gate = jnp.einsum("ij,bjd->bid", p["w_sgu"], gate) + p["b_sgu"][None, :, :]
        out = gate * res
        y = out @ p["w_out"] + p["b_out"][0]
        x = y + x
    return x


if __name__ == "__main__":
    # Small config consistent with the module: dim=32, depth=2, seq_len=8, ff_mult=4.
    B, S, DIM, DEPTH = 2, 8, 32, 2

    key = jax.random.PRNGKey(0)
    key_x, key_p = jax.random.split(key)
    x = jax.random.normal(key_x, (B, S, DIM), dtype=jnp.float32)
    params = init_gmlp_params(key_p, dim=DIM, depth=DEPTH, seq_len=S)

    out = gmlp_forward(x, params)
    out = jax.block_until_ready(out)

    ref = gmlp_forward_ref(x, params)
    assert out.shape == (B, S, DIM)
    # bf16 MXU operands vs f32 reference -> bf16-level tolerance.
    assert bool(jnp.allclose(out, ref, atol=3e-2, rtol=3e-2)), "mismatch vs JAX reference"

    print("KERNEL_OK")
</pallas_src>

<mosaic_0001>
module attributes {stable_mosaic.version = 11 : i64} {
  func.func @kernel(%arg0: i32, %arg1: i32, %arg2: memref<2x8x128xf32, #tpu.memory_space<vmem>>, %arg3: memref<1x1x128xf32, #tpu.memory_space<vmem>>, %arg4: memref<1x1x128xf32, #tpu.memory_space<vmem>>, %arg5: memref<1x128x256xbf16, #tpu.memory_space<vmem>>, %arg6: memref<1x1x256xf32, #tpu.memory_space<vmem>>, %arg7: memref<1x1x128xf32, #tpu.memory_space<vmem>>, %arg8: memref<1x1x128xf32, #tpu.memory_space<vmem>>, %arg9: memref<1x8x8xbf16, #tpu.memory_space<vmem>>, %arg10: memref<1x8x1xf32, #tpu.memory_space<vmem>>, %arg11: memref<1x128x128xbf16, #tpu.memory_space<vmem>>, %arg12: memref<1x1x128xf32, #tpu.memory_space<vmem>>, %arg13: memref<2x8x128xf32, #tpu.memory_space<vmem>>, %arg14: memref<16x128xf32, #tpu.memory_space<vmem>>, %arg15: memref<16x128xf32, #tpu.memory_space<vmem>>) attributes {dimension_semantics = [#tpu.dimension_semantics<parallel>, #tpu.dimension_semantics<arbitrary>], iteration_bounds = array<i64: 1, 2>, scalar_prefetch = 0 : i64, scratch_operands = 2 : i64, tpu.core_type = #tpu.core_type<tc>, window_params = [{transform_indices = @transform_0, window_bounds = array<i64: 2, 8, 128>}, {transform_indices = @transform_1, window_bounds = array<i64: 1, 1, 128>}, {transform_indices = @transform_2, window_bounds = array<i64: 1, 1, 128>}, {transform_indices = @transform_3, window_bounds = array<i64: 1, 128, 256>}, {transform_indices = @transform_4, window_bounds = array<i64: 1, 1, 256>}, {transform_indices = @transform_5, window_bounds = array<i64: 1, 1, 128>}, {transform_indices = @transform_6, window_bounds = array<i64: 1, 1, 128>}, {transform_indices = @transform_7, window_bounds = array<i64: 1, 8, 8>}, {transform_indices = @transform_8, window_bounds = array<i64: 1, 8, 1>}, {transform_indices = @transform_9, window_bounds = array<i64: 1, 128, 128>}, {transform_indices = @transform_10, window_bounds = array<i64: 1, 1, 128>}, {transform_indices = @transform_11, window_bounds = array<i64: 2, 8, 128>}]} {
    %c0_i32 = arith.constant 0 : i32
    %0 = arith.cmpi eq, %arg1, %c0_i32 : i32
    %1 = arith.extui %0 : i1 to i32
    %c0_i32_0 = arith.constant 0 : i32
    %2 = arith.cmpi ne, %1, %c0_i32_0 : i32
    scf.if %2 {
      %c0_69 = arith.constant 0 : index
      %c0_70 = arith.constant 0 : index
      %c0_71 = arith.constant 0 : index
      %140 = vector.load %arg2[%c0_69, %c0_70, %c0_71] : memref<2x8x128xf32, #tpu.memory_space<vmem>>, vector<2x8x128xf32>
      %141 = vector.shape_cast %140 : vector<2x8x128xf32> to vector<16x128xf32>
      %c0_72 = arith.constant 0 : index
      %c0_73 = arith.constant 0 : index
      %142 = vector.load %arg14[%c0_72, %c0_73] : memref<16x128xf32, #tpu.memory_space<vmem>>, vector<16x128xf32>
      tpu.vector_store %arg14[%c0_72, %c0_73], %141 {strides = array<i32>} : memref<16x128xf32, #tpu.memory_space<vmem>>, vector<16x128xf32>,
    } else {
    }
    %c0 = arith.constant 0 : index
    %c0_1 = arith.constant 0 : index
    %3 = vector.load %arg14[%c0, %c0_1] : memref<16x128xf32, #tpu.memory_space<vmem>>, vector<16x128xf32>
    %c0_2 = arith.constant 0 : index
    %c0_3 = arith.constant 0 : index
    %c0_4 = arith.constant 0 : index
    %4 = vector.load %arg3[%c0_2, %c0_3, %c0_4] : memref<1x1x128xf32, #tpu.memory_space<vmem>>, vector<1x1x128xf32>
    %5 = vector.shape_cast %4 : vector<1x1x128xf32> to vector<1x128xf32>
    %c0_5 = arith.constant 0 : index
    %c0_6 = arith.constant 0 : index
    %c0_7 = arith.constant 0 : index
    %6 = vector.load %arg4[%c0_5, %c0_6, %c0_7] : memref<1x1x128xf32, #tpu.memory_space<vmem>>, vector<1x1x128xf32>
    %7 = vector.shape_cast %6 : vector<1x1x128xf32> to vector<1x128xf32>
    %cst = arith.constant dense<0.000000e+00> : vector<16xf32>
    %8 = vector.multi_reduction <add>, %3, %cst [1] : vector<16x128xf32> to vector<16xf32>
    %9 = vector.shape_cast %8 : vector<16xf32> to vector<16x1xf32>
    %10 = arith.mulf %3, %3 : vector<16x128xf32>
    %cst_8 = arith.constant dense<0.000000e+00> : vector<16xf32>
    %11 = vector.multi_reduction <add>, %10, %cst_8 [1] : vector<16x128xf32> to vector<16xf32>
    %12 = vector.shape_cast %11 : vector<16xf32> to vector<16x1xf32>
    %cst_9 = arith.constant 3.125000e-02 : f32
    %13 = vector.broadcast %cst_9 : f32 to vector<16x1xf32>
    %14 = arith.mulf %9, %13 : vector<16x1xf32>
    %cst_10 = arith.constant 3.125000e-02 : f32
    %15 = vector.broadcast %cst_10 : f32 to vector<16x1xf32>
    %16 = arith.mulf %12, %15 : vector<16x1xf32>
    %17 = arith.mulf %14, %14 : vector<16x1xf32>
    %18 = arith.subf %16, %17 : vector<16x1xf32>
    %cst_11 = arith.constant 0.000000e+00 : f32
    %19 = vector.broadcast %cst_11 : f32 to vector<16x1xf32>
    %20 = arith.maximumf %18, %19 : vector<16x1xf32>
    %21 = vector.broadcast %14 : vector<16x1xf32> to vector<16x128xf32>
    %22 = arith.subf %3, %21 : vector<16x128xf32>
    %cst_12 = arith.constant 9.99999974E-6 : f32
    %23 = vector.broadcast %cst_12 : f32 to vector<16x1xf32>
    %24 = arith.addf %20, %23 : vector<16x1xf32>
    %25 = math.rsqrt %24 : vector<16x1xf32>
    %26 = vector.broadcast %25 : vector<16x1xf32> to vector<16x128xf32>
    %27 = arith.mulf %22, %26 : vector<16x128xf32>
    %28 = vector.broadcast %5 : vector<1x128xf32> to vector<16x128xf32>
    %29 = arith.mulf %27, %28 : vector<16x128xf32>
    %30 = vector.broadcast %7 : vector<1x128xf32> to vector<16x128xf32>
    %31 = arith.addf %29, %30 : vector<16x128xf32>
    %32 = arith.truncf %31 : vector<16x128xf32> to vector<16x128xbf16>
    %c0_13 = arith.constant 0 : index
    %c0_14 = arith.constant 0 : index
    %c0_15 = arith.constant 0 : index
    %33 = vector.load %arg5[%c0_13, %c0_14, %c0_15] : memref<1x128x256xbf16, #tpu.memory_space<vmem>>, vector<1x128x256xbf16>
    %34 = vector.shape_cast %33 : vector<1x128x256xbf16> to vector<128x256xbf16>
    %cst_16 = arith.constant dense<0.000000e+00> : vector<16x256xf32>
    %35 = tpu.matmul %32, %34, %cst_16 {dimension_numbers = #tpu.dot_dimension_numbers<[1], [0], [0], [1], [0, 0, 1, 1], [], []>} : vector<16x128xbf16>, vector<128x256xbf16>, vector<16x256xf32> -> vector<16x256xf32>
    %c0_17 = arith.constant 0 : index
    %c0_18 = arith.constant 0 : index
    %c0_19 = arith.constant 0 : index
    %36 = vector.load %arg6[%c0_17, %c0_18, %c0_19] : memref<1x1x256xf32, #tpu.memory_space<vmem>>, vector<1x1x256xf32>
    %37 = vector.shape_cast %36 : vector<1x1x256xf32> to vector<1x256xf32>
    %38 = vector.broadcast %37 : vector<1x256xf32> to vector<16x256xf32>
    %39 = arith.addf %35, %38 : vector<16x256xf32>
    %cst_20 = arith.constant 5.000000e-01 : f32
    %40 = vector.broadcast %cst_20 : f32 to vector<16x256xf32>
    %41 = arith.mulf %40, %39 : vector<16x256xf32>
    %cst_21 = arith.constant 0.707106769 : f32
    %42 = vector.broadcast %cst_21 : f32 to vector<16x256xf32>
    %43 = arith.mulf %39, %42 : vector<16x256xf32>
    %44 = math.absf %43 : vector<16x256xf32>
    %cst_22 = arith.constant 0.327591091 : f32
    %45 = vector.broadcast %cst_22 : f32 to vector<16x256xf32>
    %46 = arith.mulf %45, %44 : vector<16x256xf32>
    %cst_23 = arith.constant 1.000000e+00 : f32
    %47 = vector.broadcast %cst_23 : f32 to vector<16x256xf32>
    %48 = arith.addf %47, %46 : vector<16x256xf32>
    %49 = tpu.reciprocal %48 {approx = true} : vector<16x256xf32> -> vector<16x256xf32>
    %cst_24 = arith.constant 1.06140542 : f32
    %50 = vector.broadcast %cst_24 : f32 to vector<16x256xf32>
    %51 = arith.mulf %50, %49 : vector<16x256xf32>
    %cst_25 = arith.constant -1.45315206 : f32
    %52 = vector.broadcast %cst_25 : f32 to vector<16x256xf32>
    %53 = arith.addf %51, %52 : vector<16x256xf32>
    %54 = arith.mulf %53, %49 : vector<16x256xf32>
    %cst_26 = arith.constant 1.42141378 : f32
    %55 = vector.broadcast %cst_26 : f32 to vector<16x256xf32>
    %56 = arith.addf %54, %55 : vector<16x256xf32>
    %57 = arith.mulf %56, %49 : vector<16x256xf32>
    %cst_27 = arith.constant -0.284496725 : f32
    %58 = vector.broadcast %cst_27 : f32 to vector<16x256xf32>
    %59 = arith.addf %57, %58 : vector<16x256xf32>
    %60 = arith.mulf %59, %49 : vector<16x256xf32>
    %cst_28 = arith.constant 0.254829586 : f32
    %61 = vector.broadcast %cst_28 : f32 to vector<16x256xf32>
    %62 = arith.addf %60, %61 : vector<16x256xf32>
    %63 = arith.mulf %62, %49 : vector<16x256xf32>
    %cst_29 = arith.constant 0.000000e+00 : f32
    %64 = vector.broadcast %cst_29 : f32 to vector<16x256xf32>
    %65 = arith.subf %64, %44 : vector<16x256xf32>
    %66 = arith.mulf %65, %44 : vector<16x256xf32>
    %67 = math.exp %66 : vector<16x256xf32>
    %68 = arith.mulf %63, %67 : vector<16x256xf32>
    %cst_30 = arith.constant 1.000000e+00 : f32
    %69 = vector.broadcast %cst_30 : f32 to vector<16x256xf32>
    %70 = arith.subf %69, %68 : vector<16x256xf32>
    %cst_31 = arith.constant 0.000000e+00 : f32
    %71 = vector.broadcast %cst_31 : f32 to vector<16x256xf32>
    %72 = arith.cmpf oge, %43, %71 : vector<16x256xf32>
    %cst_32 = arith.constant 0.000000e+00 : f32
    %73 = vector.broadcast %cst_32 : f32 to vector<16x256xf32>
    %74 = arith.subf %73, %70 : vector<16x256xf32>
    %75 = arith.select %72, %70, %74 : vector<16x256xi1>, vector<16x256xf32>
    %cst_33 = arith.constant 1.000000e+00 : f32
    %76 = vector.broadcast %cst_33 : f32 to vector<16x256xf32>
    %77 = arith.addf %76, %75 : vector<16x256xf32>
    %78 = arith.mulf %41, %77 : vector<16x256xf32>
    %79 = vector.extract_strided_slice %78 {offsets = [0, 0], sizes = [16, 128], strides = [1, 1]} : vector<16x256xf32> to vector<16x128xf32>
    %80 = vector.extract_strided_slice %78 {offsets = [0, 128], sizes = [16, 128], strides = [1, 1]} : vector<16x256xf32> to vector<16x128xf32>
    %c0_34 = arith.constant 0 : index
    %c0_35 = arith.constant 0 : index
    %c0_36 = arith.constant 0 : index
    %81 = vector.load %arg7[%c0_34, %c0_35, %c0_36] : memref<1x1x128xf32, #tpu.memory_space<vmem>>, vector<1x1x128xf32>
    %82 = vector.shape_cast %81 : vector<1x1x128xf32> to vector<1x128xf32>
    %c0_37 = arith.constant 0 : index
    %c0_38 = arith.constant 0 : index
    %c0_39 = arith.constant 0 : index
    %83 = vector.load %arg8[%c0_37, %c0_38, %c0_39] : memref<1x1x128xf32, #tpu.memory_space<vmem>>, vector<1x1x128xf32>
    %84 = vector.shape_cast %83 : vector<1x1x128xf32> to vector<1x128xf32>
    %cst_40 = arith.constant dense<0.000000e+00> : vector<16xf32>
    %85 = vector.multi_reduction <add>, %80, %cst_40 [1] : vector<16x128xf32> to vector<16xf32>
    %86 = vector.shape_cast %85 : vector<16xf32> to vector<16x1xf32>
    %87 = arith.mulf %80, %80 : vector<16x128xf32>
    %cst_41 = arith.constant dense<0.000000e+00> : vector<16xf32>
    %88 = vector.multi_reduction <add>, %87, %cst_41 [1] : vector<16x128xf32> to vector<16xf32>
    %89 = vector.shape_cast %88 : vector<16xf32> to vector<16x1xf32>
    %cst_42 = arith.constant 1.562500e-02 : f32
    %90 = vector.broadcast %cst_42 : f32 to vector<16x1xf32>
    %91 = arith.mulf %86, %90 : vector<16x1xf32>
    %cst_43 = arith.constant 1.562500e-02 : f32
    %92 = vector.broadcast %cst_43 : f32 to vector<16x1xf32>
    %93 = arith.mulf %89, %92 : vector<16x1xf32>
    %94 = arith.mulf %91, %91 : vector<16x1xf32>
    %95 = arith.subf %93, %94 : vector<16x1xf32>
    %cst_44 = arith.constant 0.000000e+00 : f32
    %96 = vector.broadcast %cst_44 : f32 to vector<16x1xf32>
    %97 = arith.maximumf %95, %96 : vector<16x1xf32>
    %98 = vector.broadcast %91 : vector<16x1xf32> to vector<16x128xf32>
    %99 = arith.subf %80, %98 : vector<16x128xf32>
    %cst_45 = arith.constant 9.99999974E-6 : f32
    %100 = vector.broadcast %cst_45 : f32 to vector<16x1xf32>
    %101 = arith.addf %97, %100 : vector<16x1xf32>
    %102 = math.rsqrt %101 : vector<16x1xf32>
    %103 = vector.broadcast %102 : vector<16x1xf32> to vector<16x128xf32>
    %104 = arith.mulf %99, %103 : vector<16x128xf32>
    %105 = vector.broadcast %82 : vector<1x128xf32> to vector<16x128xf32>
    %106 = arith.mulf %104, %105 : vector<16x128xf32>
    %107 = vector.broadcast %84 : vector<1x128xf32> to vector<16x128xf32>
    %108 = arith.addf %106, %107 : vector<16x128xf32>
    %c0_46 = arith.constant 0 : index
    %c0_47 = arith.constant 0 : index
    %c0_48 = arith.constant 0 : index
    %109 = vector.load %arg9[%c0_46, %c0_47, %c0_48] : memref<1x8x8xbf16, #tpu.memory_space<vmem>>, vector<1x8x8xbf16>
    %110 = vector.shape_cast %109 : vector<1x8x8xbf16> to vector<8x8xbf16>
    %c0_49 = arith.constant 0 : index
    %c0_50 = arith.constant 0 : index
    %c0_51 = arith.constant 0 : index
    %111 = vector.load %arg10[%c0_49, %c0_50, %c0_51] : memref<1x8x1xf32, #tpu.memory_space<vmem>>, vector<1x8x1xf32>
    %112 = vector.shape_cast %111 : vector<1x8x1xf32> to vector<8x1xf32>
    %113 = vector.extract_strided_slice %108 {offsets = [0, 0], sizes = [8, 128], strides = [1, 1]} : vector<16x128xf32> to vector<8x128xf32>
    %114 = arith.truncf %113 : vector<8x128xf32> to vector<8x128xbf16>
    %cst_52 = arith.constant dense<0.000000e+00> : vector<8x128xf32>
    %115 = tpu.matmul %110, %114, %cst_52 {dimension_numbers = #tpu.dot_dimension_numbers<[1], [0], [0], [1], [0, 0, 1, 1], [], []>} : vector<8x8xbf16>, vector<8x128xbf16>, vector<8x128xf32> -> vector<8x128xf32>
    %116 = vector.broadcast %112 : vector<8x1xf32> to vector<8x128xf32>
    %117 = arith.addf %115, %116 : vector<8x128xf32>
    %c0_53 = arith.constant 0 : index
    %c0_54 = arith.constant 0 : index
    %118 = vector.load %arg15[%c0_53, %c0_54] : memref<16x128xf32, #tpu.memory_space<vmem>>, vector<8x128xf32>
    tpu.vector_store %arg15[%c0_53, %c0_54], %117 {strides = array<i32>} : memref<16x128xf32, #tpu.memory_space<vmem>>, vector<8x128xf32>,
    %119 = vector.extract_strided_slice %108 {offsets = [8, 0], sizes = [8, 128], strides = [1, 1]} : vector<16x128xf32> to vector<8x128xf32>
    %120 = arith.truncf %119 : vector<8x128xf32> to vector<8x128xbf16>
    %cst_55 = arith.constant dense<0.000000e+00> : vector<8x128xf32>
    %121 = tpu.matmul %110, %120, %cst_55 {dimension_numbers = #tpu.dot_dimension_numbers<[1], [0], [0], [1], [0, 0, 1, 1], [], []>} : vector<8x8xbf16>, vector<8x128xbf16>, vector<8x128xf32> -> vector<8x128xf32>
    %122 = vector.broadcast %112 : vector<8x1xf32> to vector<8x128xf32>
    %123 = arith.addf %121, %122 : vector<8x128xf32>
    %c8 = arith.constant 8 : index
    %c0_56 = arith.constant 0 : index
    %124 = vector.load %arg15[%c8, %c0_56] : memref<16x128xf32, #tpu.memory_space<vmem>>, vector<8x128xf32>
    tpu.vector_store %arg15[%c8, %c0_56], %123 {strides = array<i32>} : memref<16x128xf32, #tpu.memory_space<vmem>>, vector<8x128xf32>,
    %c0_57 = arith.constant 0 : index
    %c0_58 = arith.constant 0 : index
    %125 = vector.load %arg15[%c0_57, %c0_58] : memref<16x128xf32, #tpu.memory_space<vmem>>, vector<16x128xf32>
    %126 = arith.mulf %125, %79 : vector<16x128xf32>
    %127 = arith.truncf %126 : vector<16x128xf32> to vector<16x128xbf16>
    %c0_59 = arith.constant 0 : index
    %c0_60 = arith.constant 0 : index
    %c0_61 = arith.constant 0 : index
    %128 = vector.load %arg11[%c0_59, %c0_60, %c0_61] : memref<1x128x128xbf16, #tpu.memory_space<vmem>>, vector<1x128x128xbf16>
    %129 = vector.shape_cast %128 : vector<1x128x128xbf16> to vector<128x128xbf16>
    %cst_62 = arith.constant dense<0.000000e+00> : vector<16x128xf32>
    %130 = tpu.matmul %127, %129, %cst_62 {dimension_numbers = #tpu.dot_dimension_numbers<[1], [0], [0], [1], [0, 0, 1, 1], [], []>} : vector<16x128xbf16>, vector<128x128xbf16>, vector<16x128xf32> -> vector<16x128xf32>
    %c0_63 = arith.constant 0 : index
    %c0_64 = arith.constant 0 : index
    %c0_65 = arith.constant 0 : index
    %131 = vector.load %arg12[%c0_63, %c0_64, %c0_65] : memref<1x1x128xf32, #tpu.memory_space<vmem>>, vector<1x1x128xf32>
    %132 = vector.shape_cast %131 : vector<1x1x128xf32> to vector<1x128xf32>
    %133 = vector.broadcast %132 : vector<1x128xf32> to vector<16x128xf32>
    %134 = arith.addf %130, %133 : vector<16x128xf32>
    %135 = arith.addf %134, %3 : vector<16x128xf32>
    %c0_66 = arith.constant 0 : index
    %c0_67 = arith.constant 0 : index
    %136 = vector.load %arg14[%c0_66, %c0_67] : memref<16x128xf32, #tpu.memory_space<vmem>>, vector<16x128xf32>
    tpu.vector_store %arg14[%c0_66, %c0_67], %135 {strides = array<i32>} : memref<16x128xf32, #tpu.memory_space<vmem>>, vector<16x128xf32>,
    %c1_i32 = arith.constant 1 : i32
    %137 = arith.cmpi eq, %arg1, %c1_i32 : i32
    %138 = arith.extui %137 : i1 to i32
    %c0_i32_68 = arith.constant 0 : i32
    %139 = arith.cmpi ne, %138, %c0_i32_68 : i32
    scf.if %139 {
      %140 = vector.shape_cast %135 : vector<16x128xf32> to vector<2x8x128xf32>
      %c0_69 = arith.constant 0 : index
      %c0_70 = arith.constant 0 : index
      %c0_71 = arith.constant 0 : index
      %141 = vector.load %arg13[%c0_69, %c0_70, %c0_71] : memref<2x8x128xf32, #tpu.memory_space<vmem>>, vector<2x8x128xf32>
      tpu.vector_store %arg13[%c0_69, %c0_70, %c0_71], %140 {strides = array<i32>} : memref<2x8x128xf32, #tpu.memory_space<vmem>>, vector<2x8x128xf32>,
    } else {
    }
    return
  }
  func.func @transform_0(%arg0: i32, %arg1: i32) -> (i32, i32, i32) {
    %c0_i32 = arith.constant 0 : i32
    %c0_i32_0 = arith.constant 0 : i32
    %c0_i32_1 = arith.constant 0 : i32
    return %arg0, %c0_i32, %c0_i32_0 : i32, i32, i32
  }
  func.func @transform_1(%arg0: i32, %arg1: i32) -> (i32, i32, i32) {
    %c0_i32 = arith.constant 0 : i32
    %c0_i32_0 = arith.constant 0 : i32
    %c0_i32_1 = arith.constant 0 : i32
    return %arg1, %c0_i32, %c0_i32_0 : i32, i32, i32
  }
  func.func @transform_2(%arg0: i32, %arg1: i32) -> (i32, i32, i32) {
    %c0_i32 = arith.constant 0 : i32
    %c0_i32_0 = arith.constant 0 : i32
    %c0_i32_1 = arith.constant 0 : i32
    return %arg1, %c0_i32, %c0_i32_0 : i32, i32, i32
  }
  func.func @transform_3(%arg0: i32, %arg1: i32) -> (i32, i32, i32) {
    %c0_i32 = arith.constant 0 : i32
    %c0_i32_0 = arith.constant 0 : i32
    %c0_i32_1 = arith.constant 0 : i32
    return %arg1, %c0_i32, %c0_i32_0 : i32, i32, i32
  }
  func.func @transform_4(%arg0: i32, %arg1: i32) -> (i32, i32, i32) {
    %c0_i32 = arith.constant 0 : i32
    %c0_i32_0 = arith.constant 0 : i32
    %c0_i32_1 = arith.constant 0 : i32
    return %arg1, %c0_i32, %c0_i32_0 : i32, i32, i32
  }
  func.func @transform_5(%arg0: i32, %arg1: i32) -> (i32, i32, i32) {
    %c0_i32 = arith.constant 0 : i32
    %c0_i32_0 = arith.constant 0 : i32
    %c0_i32_1 = arith.constant 0 : i32
    return %arg1, %c0_i32, %c0_i32_0 : i32, i32, i32
  }
  func.func @transform_6(%arg0: i32, %arg1: i32) -> (i32, i32, i32) {
    %c0_i32 = arith.constant 0 : i32
    %c0_i32_0 = arith.constant 0 : i32
    %c0_i32_1 = arith.constant 0 : i32
    return %arg1, %c0_i32, %c0_i32_0 : i32, i32, i32
  }
  func.func @transform_7(%arg0: i32, %arg1: i32) -> (i32, i32, i32) {
    %c0_i32 = arith.constant 0 : i32
    %c0_i32_0 = arith.constant 0 : i32
    %c0_i32_1 = arith.constant 0 : i32
    return %arg1, %c0_i32, %c0_i32_0 : i32, i32, i32
  }
  func.func @transform_8(%arg0: i32, %arg1: i32) -> (i32, i32, i32) {
    %c0_i32 = arith.constant 0 : i32
    %c0_i32_0 = arith.constant 0 : i32
    %c0_i32_1 = arith.constant 0 : i32
    return %arg1, %c0_i32, %c0_i32_0 : i32, i32, i32
  }
  func.func @transform_9(%arg0: i32, %arg1: i32) -> (i32, i32, i32) {
    %c0_i32 = arith.constant 0 : i32
    %c0_i32_0 = arith.constant 0 : i32
    %c0_i32_1 = arith.constant 0 : i32
    return %arg1, %c0_i32, %c0_i32_0 : i32, i32, i32
  }
  func.func @transform_10(%arg0: i32, %arg1: i32) -> (i32, i32, i32) {
    %c0_i32 = arith.constant 0 : i32
    %c0_i32_0 = arith.constant 0 : i32
    %c0_i32_1 = arith.constant 0 : i32
    return %arg1, %c0_i32, %c0_i32_0 : i32, i32, i32
  }
  func.func @transform_11(%arg0: i32, %arg1: i32) -> (i32, i32, i32) {
    %c0_i32 = arith.constant 0 : i32
    %c0_i32_0 = arith.constant 0 : i32
    %c0_i32_1 = arith.constant 0 : i32
    return %arg0, %c0_i32, %c0_i32_0 : i32, i32, i32
  }
}

</mosaic_0001>

<bundles_post_ra>
// kernel: tpu_custom_call.1
= control target key start
LH: loop header
LB: loop body
LE: loop exit
PB: predicated region body
PF: predicated region fallthrough
CT: control target
= control target key end

     0   :  { %s2397_s0 = inlined_call_operand.vmem [shape: f32[2,8,128], index: 0, kind: input, shape index: {}]   ;;  %s2398_s1 = inlined_call_operand.hbm [shape: f32[2,1,128], index: 1, kind: input, shape index: {}]   ;;  %s2399_s2 = inlined_call_operand.hbm [shape: f32[2,1,128], index: 2, kind: input, shape index: {}]   ;;  %s2400_s3 = inlined_call_operand.hbm [shape: bf16[2,128,256], index: 3, kind: input, shape index: {}]   ;;  %s2401_s4 = inlined_call_operand.hbm [shape: f32[2,1,256], index: 4, kind: input, shape index: {}]   ;;  %s2402_s5 = inlined_call_operand.hbm [shape: f32[2,1,128], index: 5, kind: input, shape index: {}]   ;;  %s2403_s6 = inlined_call_operand.hbm [shape: f32[2,1,128], index: 6, kind: input, shape index: {}]   ;;  %s2404_s7 = inlined_call_operand.vmem [shape: bf16[2,8,8], index: 7, kind: input, shape index: {}]   ;;  %s2405_s8 = inlined_call_operand.vmem [shape: f32[2,8,1], index: 8, kind: input, shape index: {}]   ;;  %s2406_s9 = inlined_call_operand.hbm [shape: bf16[2,128,128], index: 9, kind: input, shape index: {}]   ;;  %s2407_s10 = inlined_call_operand.vmem [shape: f32[2,1,128], index: 10, kind: input, shape index: {}]   ;;  %s2408_s11 = inlined_call_operand.hbm [shape: f32[2,8,128], index: 11, kind: output, shape index: {}]  }
   0x1   :  { %2415 = sst [smem:[#allocation26_spill]] %s2398_s1 }
   0x2   :  { %2416 = sst [smem:[#allocation27_spill]] %s2399_s2 }
   0x3   :  { %2417 = sst [smem:[#allocation28_spill]] %s2400_s3 }
   0x4   :  { %2418 = sst [smem:[#allocation29_spill]] %s2401_s4 }
   0x5   :  { %2419 = sst [smem:[#allocation30_spill]] %s2403_s6 }
   0x6   :  { %2420 = sst [smem:[#allocation31_spill]] %s2408_s11 }
   0x7   :  { %16 = vsyncpa [#allocation5], 0 }
   0x8   :  { %18 = vsyncpa [#allocation5 + $0x1], 0 }
   0x9   :  { %19 = vsyncpa [#allocation8], 0 }
   0xa   :  { %21 = vsyncpa [#allocation8 + $0x1], 0 }
   0xb   :  { %22 = vsyncpa [#allocation11], 0 }
   0xc   :  { %24 = vsyncpa [#allocation11 + $0x1], 0 }
   0xd   :  { %25 = vsyncpa [#allocation14], 0 }
   0xe   :  { %27 = vsyncpa [#allocation14 + $0x1], 0 }
   0xf   :  { %28 = vsyncpa [#allocation6], 0  ;;  %s2090_s17 = smov 0   ;;  %s2092_s18 = smov 0  }
  0x10   :  { %s2094_s19 = smov 0   ;;  %s2096_s20 = smov 0  }
  0x11   :  { %s2098_s21 = smov 0   ;;  %s2100_s22 = smov 0  }
  0x12 LB: > { %2421 = sst [smem:[#allocation22_spill]] %s2008_s19  ;;  %s2119_s23 = sadd.s32 4294967295, %s2020_s22   ;;  %s2020_s22 = sphi %s2100_s22, %s34_s22   ;;  %s2016_s21 = sphi %s2098_s21, %s2446_s21   ;;  %s2012_s20 = sphi %s2096_s20, %s2445_s20   ;;  %s2008_s19 = sphi %s2094_s19, %s2441_s19   ;;  %s2004_s18 = sphi %s2092_s18, %s2444_s18   ;;  %s2000_s17 = sphi %s2090_s17, %s2443_s17  }
  0x13   : > { %2422 = sst [smem:[#allocation23_spill]] %s2020_s22  ;;  %s43_s24 = sadd.s32 1, %s2016_s21 }
  0x14   : > { %p44_p0 = scmp.ge.s32.totalorder %s43_s24, 2  ;;  %s79_s25 = sadd.s32 1, %s2008_s19 }
  0x15   : > { %p86_p1 = scmp.ne.s32.totalorder %s2008_s19, %s2004_s18  ;;  %p87_p2 = scmp.eq.s32.totalorder %s2020_s22, 0 }
  0x16   : > { %s2448_s24 = smov (%p44_p0, %s43_s24), 0  ;;  %p92_p4 = scmp.ne.s32.totalorder %s2004_s18, %s2000_s17 }
  0x17   : > { %2423 = sst [smem:[#allocation24_spill]] %s2448_s24  ;;  %p88_p3 = por %p87_p2, %p86_p1 }
  0x18   : > { %s76_s26 = ssub.s32 %s2016_s21, %s2448_s24  ;;  %p93_p5 = scmp.eq.s32.totalorder %s2119_s23, 0 }
  0x19   : > { %p77_p6 = scmp.eq.s32.totalorder %s76_s26, 0  ;;  %p1626_p8 = scmp.lt.s32.totalorder %s2020_s22, 2 }
  0x1a   : > { %p2132_p7 = por %p93_p5, %p92_p4  ;;  %s2141_s29 = sand.u32 1, %s2008_s19  }
  0x1b   : > { %s2138_s28 = scalar_select %p77_p6, %s2008_s19, %s79_s25  }
  0x1c   : > { %p2143_p9 = pnand %p1626_p8, %p88_p3  ;;  %s2148_s12 = sand.u32 1, %s2020_s22  }
  0x1d   : > { %2425 = sst [smem:[#allocation25_spill]] %s2138_s28  ;;  %s405_s16 = scalar_lea.vmem [#allocation7], %s2141_s29 }
  0x1e   : > { %s2427_s2 = sld [smem:[#allocation27_spill]]  ;;  %s412_s17 = sshll.u32 %s405_s16, 4  ;;  %s413_s17 = int_to_ptr.vmem [resolvable:$true] %s412_s17 }
  0x1f   : > { %p1450_p10 = scmp.ge.s32.totalorder %s2020_s22, 1  ;;  %s2411_s26 = scalar_lea.sflag [#allocation8], %s2148_s12 }
  0x20   : > { %p534_p11 = scmp.lt.s32.totalorder %s2020_s22, 3  ;;  %s1445_s13 = sshll.u32 %s2141_s29, 1 }
  0x21   : > { %s1446_s14 = sshll.u32 %s2016_s21, 1  ;;  %s2429_s4 = sld [smem:[#allocation29_spill]] }
  0x22   : > { %p2164_p12 = pnand %p1450_p10, %p534_p11  ;;  %s445_s28 = scalar_lea.vmem [#allocation10], %s1445_s13 }
  0x23   : > { %s453_s19 = sshll.u32 %s445_s28, 4  ;;  %s2430_s6 = sld [smem:[#allocation30_spill]]  ;;  %s454_s19 = int_to_ptr.vmem [resolvable:$true] %s453_s19 }
  0x24   : > { %s408_s15 = scalar_lea.hbm %s2427_s2, %s2016_s21  ;;  %s2431_s1 = sld [smem:[#allocation26_spill]] }
  0x25   : > { %s410_s25 = sshll.u32 %s408_s15, 4  ;;  %s2432_s3 = sld [smem:[#allocation28_spill]]  ;;  %s411_s25 = int_to_ptr.hbm [resolvable:$true] %s410_s25 }
  0x26   : > { %1610 = dma.hbm_to_vmem [thread:$0]  (!%p2143_p9), %s411_s25, 16, %s413_s17, %s2411_s26  }
  0x27   : > { %s449_s24 = scalar_lea.hbm %s2429_s4, %s1446_s14  ;;  %s2412_s17 = scalar_lea.sflag [#allocation11], %s2148_s12 }
  0x28   : > { %s451_s11 = sshll.u32 %s449_s24, 4  ;;  %s480_s14 = scalar_lea.vmem [#allocation13], %s2141_s29  ;;  %s452_s11 = int_to_ptr.hbm [resolvable:$true] %s451_s11 }
  0x29   : > { %1616 = dma.hbm_to_vmem [thread:$0]  (!%p2143_p9), %s452_s11, 32, %s454_s19, %s2412_s17  }
  0x2a   : > { %s483_s15 = scalar_lea.hbm %s2430_s6, %s2016_s21  ;;  %s487_s13 = sshll.u32 %s480_s14, 4  ;;  %s488_s13 = int_to_ptr.vmem [resolvable:$true] %s487_s13 }
  0x2b   : > { %s485_s16 = sshll.u32 %s483_s15, 4  ;;  %s2413_s24 = scalar_lea.sflag [#allocation14], %s2148_s12  ;;  %s486_s16 = int_to_ptr.hbm [resolvable:$true] %s485_s16 }
  0x2c   : > { %1622 = dma.hbm_to_vmem [thread:$0]  (!%p2143_p9), %s486_s16, 16, %s488_s13, %s2413_s24  }
  0x2d   : > { %s391_s11 = scalar_lea.hbm %s2431_s1, %s2016_s21  ;;  %s388_s19 = scalar_lea.vmem [#allocation4], %s2141_s29 }
  0x2e   : > { %s395_s17 = sshll.u32 %s388_s19, 4  ;;  %s393_s26 = sshll.u32 %s391_s11, 4  ;;  %s396_s17 = int_to_ptr.vmem [resolvable:$true] %s395_s17  ;;  %s394_s26 = int_to_ptr.hbm [resolvable:$true] %s393_s26 }
  0x2f   : > { %s1442_s25 = sshll.u32 %s2141_s29, 7  ;;  %s386_s15 = scalar_lea.sflag [#allocation5], %s2141_s29 }
  0x30   : > { %1607 = dma.hbm_to_vmem [thread:$0]  (!%p2143_p9), %s394_s26, 16, %s396_s17, %s386_s15  }
  0x31   : > { %s1560_s14 = sshll.u32 %s2016_s21, 7  ;;  %s423_s13 = scalar_lea.vmem [#allocation9], %s1442_s25 }
  0x32   : > { %s428_s4 = scalar_lea.hbm %s2432_s3, %s1560_s14  ;;  %s431_s28 = sshll.u32 %s423_s13, 4  ;;  %s432_s28 = int_to_ptr.vmem [resolvable:$true] %s431_s28 }
  0x33   : > { %s429_s11 = sshll.u32 %s428_s4, 4  ;;  %s2022_s19 = smov 128   ;;  %s430_s11 = int_to_ptr.hbm [resolvable:$true] %s429_s11 }
  0x34   : > { %s2023_s24 = smov 8   ;;  %s2433_s1 = scalar_lea.sflag [#allocation8], %s2148_s12 }
  0x35   : > { %1613 = dma.hbm_to_vmem [thread:$0]  (!%p2143_p9), %s430_s11, 2048, %s432_s28, %s2433_s1, %s2022_s19, %s2022_s19, %s2023_s24  }
  0x36   : > { %s466_s15 = scalar_lea.hbm %s2402_s5, %s2016_s21  ;;  %s463_s6 = scalar_lea.vmem [#allocation12], %s2141_s29 }
  0x37   : > { %s470_s14 = sshll.u32 %s463_s6, 4  ;;  %s468_s16 = sshll.u32 %s466_s15, 4  ;;  %s471_s14 = int_to_ptr.vmem [resolvable:$true] %s470_s14  ;;  %s469_s16 = int_to_ptr.hbm [resolvable:$true] %s468_s16 }
  0x38   : > { %s1447_s25 = sshll.u32 %s2141_s29, 6  ;;  %s2434_s4 = scalar_lea.sflag [#allocation11], %s2148_s12 }
  0x39   : > { %1619 = dma.hbm_to_vmem [thread:$0]  (!%p2143_p9), %s469_s16, 16, %s471_s14, %s2434_s4  }
  0x3a   : > { %s1561_s13 = sshll.u32 %s2016_s21, 6  ;;  %s512_s24 = scalar_lea.vmem [#allocation15], %s1447_s25 }
  0x3b   : > { %s517_s1 = scalar_lea.hbm %s2406_s9, %s1561_s13  ;;  %s520_s28 = sshll.u32 %s512_s24, 4  ;;  %s521_s28 = int_to_ptr.vmem [resolvable:$true] %s520_s28 }
  0x3c   : > { %s518_s11 = sshll.u32 %s517_s1, 4  ;;  %s2024_s19 = smov 64   ;;  %s519_s11 = int_to_ptr.hbm [resolvable:$true] %s518_s11 }
  0x3d   : > { %s2025_s17 = smov 4   ;;  %s2435_s26 = scalar_lea.sflag [#allocation14], %s2148_s12 }
  0x3e   : > { %1625 = dma.hbm_to_vmem [thread:$0]  (!%p2143_p9), %s519_s11, 1024, %s521_s28, %s2435_s26, %s2024_s19, %s2024_s19, %s2025_s17  }
  0x3f   : > { %538 = sbr.rel (%p2164_p12) target bundleno = 900 (0x384), region = 64  ;;  %s2224_s29 = sand.u32 (!%p2164_p12), 1, %s2004_s18  }
  0x40   : > { %s541_s3 = scalar_lea.sflag (!%p2164_p12), [#allocation5], %s2224_s29  ;;  %s543_s22 = scalar_lea.vmem (!%p2164_p12), [#allocation4], %s2224_s29 }
  0x44   : > { %1979 = dma.done.wait (%p2132_p7), %s541_s3, 16  }
  0x45   : > { %1981 = vsyncadd (%p2132_p7), %s541_s3, 4294967280  ;;  %s549_s30 = sand.u32 1, %s2119_s23   ;;  %s552_s2 = scalar_lea.vmem [#allocation7], %s2224_s29 }
  0x46   : > { %s550_s12 = scalar_lea.sflag [#allocation8], %s549_s30 }
  0x47   : > { %1983 = dma.done.wait (%p2132_p7), %s550_s12, 2064  }
  0x48   : > { %1985 = vsyncadd (%p2132_p7), %s550_s12, 4294965232  ;;  %s1451_s15 = sshll.u32 %s2224_s29, 7  ;;  %s1452_s6 = sshll.u32 %s2224_s29, 1 }
  0x49   : > { %s2240_s14 = scalar_lea.vmem [#allocation9], %s1451_s15  ;;  %s569_s16 = scalar_lea.sflag [#allocation11], %s549_s30 }
  0x4a   : > { %s2242_s25 = scalar_lea.vmem [#allocation10], %s1452_s6 }
  0x4b   : > { %1987 = dma.done.wait (%p2132_p7), %s569_s16, 48  }
  0x4c   : > { %1989 = vsyncadd (%p2132_p7), %s569_s16, 4294967248  ;;  %s588_s13 = scalar_lea.sflag [#allocation14], %s549_s30 }
  0x4d   : > { %1991 = dma.done.wait (%p2132_p7), %s588_s13, 1040  }
  0x4e   : > { %1993 = vsyncadd (%p2132_p7), %s588_s13, 4294966256  ;;  %s1453_s24 = sshll.u32 %s2224_s29, 6  ;;  %p683_p13 = scmp.lt.s32.totalorder %s2012_s20, 1 }
  0x4f   : > { %s2275_s13 = scalar_lea.vmem [#allocation15], %s1453_s24  ;;  %p1456_p0 = scmp.ne.s32.totalorder %s2012_s20, 0 }
  0x50   : > { %s2257_s28 = scalar_select %p683_p13, %s2012_s20, 1 }
  0x51   : > { %699 = sbr.rel (%p1456_p0) target bundleno = 89 (0x59), region = 96 }
  0x52   : > { %s1454_s11 = sshll.u32 %s2257_s28, 2  ;;  %s1455_s19 = sshll.u32 %s2257_s28, 3 }
  0x53   : > { %s2264_s3 = scalar_lea.vmem %s2404_s7, %s1454_s11  ;;  %s2269_s12 = scalar_lea.vmem %s2405_s8, %s1455_s19 }
  0x54   : > { %s693_s16 = scalar_lea.vmem %s2407_s10, %s2257_s28 }
  0x56   : > { %v700_v0 = vld [vmem:[%s2397_s0] sm:$0xff]  ;;  %v701_v1 = vld [vmem:[%s2397_s0 + $0x8] sm:$0xff] }
  0x57   : > { %702 = vst [vmem:[#allocation2] sm:$0xff] %v700_v0 }
  0x58   : > { %703 = vst [vmem:[#allocation2 + $0x8] sm:$0xff] %v701_v1 }
  0x59 PF: > { %v1515_v6 = vld [vmem:[%s2240_s14 + $0x70] sm:$0xf]  ;;  %v1577_v7 = vld [vmem:[%s2240_s14 + $0x74] sm:$0xf0]  ;;  %v1576_v8 = vld [vmem:[%s2240_s14 + $0x74] sm:$0xf] }
  0x5a   : > { %v1516_v9 = vor.u32 %v1577_v7, %v1515_v6  ;;  %v1517_v10 = vld [vmem:[%s2240_s14 + $0x78] sm:$0xf0]  ;;  %v1507_v12 = vld [vmem:[%s2240_s14 + $0x60] sm:$0xf]  ;;  %v1575_v13 = vld [vmem:[%s2240_s14 + $0x64] sm:$0xf0] }
  0x5b   : > { %v1520_v11 = vor.u32 %v1576_v8, %v1517_v10  ;;  %v1574_v14 = vld [vmem:[%s2240_s14 + $0x64] sm:$0xf]  ;;  %v1508_v15 = vor.u32 %v1575_v13, %v1507_v12  ;;  %v1509_v16 = vld [vmem:[%s2240_s14 + $0x68] sm:$0xf0]  ;;  %v1499_v18 = vld [vmem:[%s2240_s14 + $0x50] sm:$0xf] }
  0x5c   : > { %867 = vmatpush.bf16.msra.mxu0 %v1516_v9  ;;  %v1512_v17 = vor.u32 %v1574_v14, %v1509_v16  ;;  %v1573_v19 = vld [vmem:[%s2240_s14 + $0x54] sm:$0xf0]  ;;  %v1572_v20 = vld [vmem:[%s2240_s14 + $0x54] sm:$0xf]  ;;  %v1501_v22 = vld [vmem:[%s2240_s14 + $0x58] sm:$0xf0] }
  0x5d   : > { %881 = vmatpush.bf16.msra.mxu1 %v1520_v11  ;;  %v1500_v21 = vor.u32 %v1573_v19, %v1499_v18  ;;  %v1504_v23 = vor.u32 %v1572_v20, %v1501_v22  ;;  %v1491_v24 = vld [vmem:[%s2240_s14 + $0x40] sm:$0xf]  ;;  %v1571_v25 = vld [vmem:[%s2240_s14 + $0x44] sm:$0xf0]  ;;  %v1570_v26 = vld [vmem:[%s2240_s14 + $0x44] sm:$0xf] }
  0x5e   : > { %v2284_v2 = vld [vmem:[#allocation2] sm:$0xff]  ;;  %v1492_v27 = vor.u32 %v1571_v25, %v1491_v24  ;;  %v1569_v31 = vld [vmem:[%s2240_s14 + $0x34] sm:$0xf0]  ;;  %v1568_v32 = vld [vmem:[%s2240_s14 + $0x34] sm:$0xf]  ;;  %vm1069_vm14 = vcmask 1043456  }
  0x5f   : > { %708 = vadd.xlane.f32.xlu0 %v2284_v2  ;;  %v712_v3 = vmul.f32 %v2284_v2, %v2284_v2  ;;  %v2289_v4 = vld [vmem:[#allocation2 + $0x8] sm:$0xff]  ;;  %v1493_v28 = vld [vmem:[%s2240_s14 + $0x48] sm:$0xf0]  ;;  %v1483_v30 = vld [vmem:[%s2240_s14 + $0x30] sm:$0xf]  ;;  %vm1065_vm15 = vcmask 64512  }
  0x60   : > { %v713_v5 = vmul.f32 %v2289_v4, %v2289_v4  ;;  %868 = vmatpush.bf16.msra.mxu0 %v1508_v15  ;;  %v1496_v29 = vor.u32 %v1570_v26, %v1493_v28  ;;  %v1484_v33 = vor.u32 %v1569_v31, %v1483_v30  ;;  %v1485_v34 = vld [vmem:[%s2240_s14 + $0x38] sm:$0xf0]  ;;  %v1475_v37 = vld [vmem:[%s2240_s14 + $0x20] sm:$0xf]  ;;  %v1567_v38 = vld [vmem:[%s2240_s14 + $0x24] sm:$0xf0] }
  0x61   : > { %714 = vadd.xlane.f32.xlu1 %v712_v3  ;;  %882 = vmatpush.bf16.msra.mxu1 %v1512_v17  ;;  %v1488_v35 = vor.u32 %v1568_v32, %v1485_v34  ;;  %v1566_v39 = vld [vmem:[%s2240_s14 + $0x24] sm:$0xf]  ;;  %v1476_v41 = vor.u32 %v1567_v38, %v1475_v37  ;;  %v1477_v42 = vld [vmem:[%s2240_s14 + $0x28] sm:$0xf0]  ;;  %v1467_v43 = vld [vmem:[%s2240_s14 + $0x10] sm:$0xf] }
  0x62   : > { %v1480_v45 = vor.u32 %v1566_v39, %v1477_v42  ;;  %v1565_v46 = vld [vmem:[%s2240_s14 + $0x14] sm:$0xf0]  ;;  %v1564_v47 = vld [vmem:[%s2240_s14 + $0x14] sm:$0xf]  ;;  %v1469_v48 = vld [vmem:[%s2240_s14 + $0x18] sm:$0xf0] }
  0x63   : > { %v1468_v51 = vor.u32 %v1565_v46, %v1467_v43  ;;  %v1472_v52 = vor.u32 %v1564_v47, %v1469_v48  ;;  %v1459_v53 = vld [vmem:[%s2240_s14] sm:$0xf]  ;;  %v1563_v54 = vld [vmem:[%s2240_s14 + $0x4] sm:$0xf0]  ;;  %v1562_v56 = vld [vmem:[%s2240_s14 + $0x4] sm:$0xf] }
  0x64   : > { %869 = vmatpush.bf16.msra.mxu0 %v1500_v21  ;;  %v1461_v57 = vld [vmem:[%s2240_s14 + $0x8] sm:$0xf0]  ;;  %v1460_v59 = vor.u32 %v1563_v54, %v1459_v53  ;;  %p1555_p1 = scmp.ne.s32.totalorder %s2012_s20, 1 }
  0x65   : > { %883 = vmatpush.bf16.msra.mxu1 %v1504_v23  ;;  %v1464_v61 = vor.u32 %v1562_v56, %v1461_v57  ;;  %v1687_v22 = vld [vmem:[%s543_s22] ss:$0 sm:$0xff]  ;;  %s2436_s22 = scalar_lea.vmem [#allocation12], %s2224_s29 }
  0x66   : > { %v1688_v28 = vld [vmem:[%s552_s2] ss:$0 sm:$0xff]  ;;  %s2437_s2 = scalar_lea.vmem [#allocation13], %s2224_s29 }
  0x67   : > { %710 = vadd.xlane.f32.xlu0 %v2289_v4 }
  0x68   : > { %870 = vmatpush.bf16.msra.mxu0 %v1492_v27 }
  0x69   : > { %716 = vadd.xlane.f32.xlu1 %v713_v5  ;;  %884 = vmatpush.bf16.msra.mxu1 %v1496_v29 }
  0x6c   : > { %871 = vmatpush.bf16.msra.mxu0 %v1484_v33  ;;  %v2333_v33 = vld [vmem:[%s2242_s25] sm:$0x3] }
  0x6d   : > { %885 = vmatpush.bf16.msra.mxu1 %v1488_v35  ;;  %v784_v34 = vperm.slane %v2333_v33, 1 }
  0x70   : > { %872 = vmatpush.bf16.msra.mxu0 %v1476_v41 }
  0x71   : > { %886 = vmatpush.bf16.msra.mxu1 %v1480_v45 }
  0x74   : > { %873 = vmatpush.bf16.msra.mxu0 %v1468_v51 }
  0x75   : > { %887 = vmatpush.bf16.msra.mxu1 %v1472_v52 }
  0x78   : > { %874 = vmatpush.bf16.msra.mxu0 %v1460_v59 }
  0x79   : > { %888 = vmatpush.bf16.msra.mxu1 %v1464_v61 }
  0xd2   : > { %v709_v36 = vpop.xlane.xlu0 %708 }
  0xd3   : > { %v718_v40 = vmul.f32 0.03125, %v709_v36 }
  0xd4   : > { %v715_v44 = vpop.xlane.xlu1 %714 }
  0xd5   : > { %v722_v49 = vmul.f32 %v718_v40, %v718_v40  ;;  %v720_v50 = vmul.f32 0.03125, %v715_v44  ;;  %v728_v19 = vsub.f32 %v2284_v2, %v718_v40 }
  0xd7   : > { %v724_v55 = vsub.f32 %v720_v50, %v722_v49 }
  0xd9   : > { %v726_v58 = vmax.f32 %v724_v55, 0.0 }
  0xda   : > { %v711_v60 = vpop.xlane.xlu0 %710 }
  0xdb   : > { %v730_v62 = vadd.f32 1e-05, %v726_v58  ;;  %v719_v63 = vmul.f32 0.03125, %v711_v60 }
  0xdc   : > { %v717_v0 = vpop.xlane.xlu1 %716 }
  0xdd   : > { %1692 = vrsqrt.f32 %v730_v62  ;;  %v723_v1 = vmul.f32 %v719_v63, %v719_v63  ;;  %v721_v3 = vmul.f32 0.03125, %v717_v0  ;;  %vm738_vm1 = vweird.f32 %v730_v62 }
  0xde   : > { %v729_v24 = vsub.f32 %v2289_v4, %v719_v63 }
  0xdf   : > { %v725_v5 = vsub.f32 %v721_v3, %v723_v1 }
  0xe1   : > { %v727_v6 = vmax.f32 %v725_v5, 0.0 }
  0xe3   : > { %v1693_v7 = vpop.eup %1692  ;;  %v731_v9 = vadd.f32 1e-05, %v727_v6 }
  0xe4   : > { %v733_v8 = vmul.f32 %v1693_v7, %v730_v62  ;;  %vm739_vm0 = vweird.f32 %v1693_v7 }
  0xe5   : > { %1694 = vrsqrt.f32 %v731_v9  ;;  %vm740_vm2 = vmor %vm738_vm1, %vm739_vm0  ;;  %vm748_vm4 = vweird.f32 %v731_v9 }
  0xe6   : > { %v734_v10 = vmul.f32 %v1693_v7, %v733_v8 }
  0xe8   : > { %v735_v11 = vmul.f32 0.5, %v734_v10 }
  0xea   : > { %v736_v12 = vsub.f32 1.5, %v735_v11 }
  0xeb   : > { %v1695_v13 = vpop.eup %1694 }
  0xec   : > { %v743_v14 = vmul.f32 %v1695_v13, %v731_v9  ;;  %v737_v15 = vmul.f32 %v1693_v7, %v736_v12  ;;  %vm749_vm3 = vweird.f32 %v1695_v13 }
  0xed   : > { %vm750_vm5 = vmor %vm748_vm4, %vm749_vm3 }
  0xee   : > { %v744_v16 = vmul.f32 %v1695_v13, %v743_v14  ;;  %v741_v18 = vsel %vm740_vm2, %v1693_v7, %v737_v15 }
  0xef   : > { %v752_v21 = vmul.f32 %v741_v18, %v728_v19 }
  0xf0   : > { %v745_v17 = vmul.f32 0.5, %v744_v16 }
  0xf1   : > { %v757_v27 = vmul.f32 %v1687_v22, %v752_v21 }
  0xf2   : > { %v746_v20 = vsub.f32 1.5, %v745_v17 }
  0xf3   : > { %v762_v30 = vadd.f32 %v1688_v28, %v757_v27 }
  0xf4   : > { %v747_v23 = vmul.f32 %v1695_v13, %v746_v20 }
  0xf6   : > { %v751_v25 = vsel %vm750_vm5, %v1695_v13, %v747_v23 }
  0xf7   : > { %v753_v26 = vmul.f32 %v751_v25, %v729_v24 }
  0xf9   : > { %v758_v29 = vmul.f32 %v1687_v22, %v753_v26 }
  0xfb   : > { %v763_v31 = vadd.f32 %v1688_v28, %v758_v29 }
  0xfd   : > { %v764_v32 = vpack.c.bf16 %v763_v31, %v762_v30 }
  0xff   : > { %875 = vmatmul.bf16.vlgmr.msra.gmra.mxu0 %v764_v32  ;;  %889 = vmatmul.bf16.vlgmr.msra.gmra.mxu1 %v764_v32 }
 0x17c   : > { %v890_v35 = vpop.f32.mrf.mxu1 }
 0x17d   : > { %v891_v36 = vadd.f32 %v890_v35, %v784_v34 }
 0x17f   : > { %v900_v37 = vmul.f32 0.70710677, %v891_v36  ;;  %v896_v15 = vmul.f32 0.5, %v891_v36 }
 0x181   : > { %v904_v38 = vand.u32 2147483647, %v900_v37  ;;  %vm980_vm6 = vcmp.ge.f32.partialorder %v900_v37, 0.0 }
 0x183   : > { %v908_v39 = vmul.f32 0.3275911, %v904_v38  ;;  %v956_v47 = vsub.f32 0.0, %v904_v38 }
 0x184   : > { %v892_v40 = vpop.f32.mrf.mxu1 }
 0x185   : > { %v912_v41 = vadd.f32 1.0, %v908_v39  ;;  %v893_v42 = vadd.f32 %v892_v40, %v784_v34  ;;  %v960_v51 = vmul.f32 %v956_v47, %v904_v38 }
 0x187   : > { %1696 = vrcp.f32 %v912_v41  ;;  %v902_v43 = vmul.f32 0.70710677, %v893_v42  ;;  %v965_v54 = vmul.f32 1.442695, %v960_v51  ;;  %v898_v24 = vmul.f32 0.5, %v893_v42 }
 0x189   : > { %v906_v44 = vand.u32 2147483647, %v902_v43  ;;  %vm982_vm7 = vcmp.ge.f32.partialorder %v902_v43, 0.0 }
 0x18b   : > { %v910_v45 = vmul.f32 0.3275911, %v906_v44  ;;  %v958_v56 = vsub.f32 0.0, %v906_v44 }
 0x18d   : > { %v1697_v46 = vpop.eup %1696  ;;  %v914_v48 = vadd.f32 1.0, %v910_v45  ;;  %v962_v61 = vmul.f32 %v958_v56, %v906_v44  ;;  %v1058_v56 = vld [vmem:[%s2269_s12] sm:$0xff] }
 0x18e   : > { %v920_v49 = vmul.f32 1.0614054, %v1697_v46 }
 0x18f   : > { %1698 = vrcp.f32 %v914_v48  ;;  %v969_v3 = vmul.f32 1.442695, %v962_v61  ;;  %v2026_v61 = vmov 0  }
 0x190   : > { %v924_v50 = vadd.f32 -1.4531521, %v920_v49  ;;  %1700 = vpow2.f32 %v965_v54  ;;  %1685 = vset.pattern.permute.xlu2 %v2026_v61  ;;  %1686 = vset.pattern.permute.xlu0 %v2026_v61 }
 0x191   : > { %1702 = vpow2.f32 %v969_v3  ;;  %v1690_v3 = vld [vmem:[%s2437_s2] ss:$0 sm:$0xff] }
 0x192   : > { %v928_v52 = vmul.f32 %v1697_v46, %v924_v50 }
 0x194   : > { %v932_v53 = vadd.f32 1.4214138, %v928_v52 }
 0x195   : > { %v1699_v55 = vpop.eup %1698 }
 0x196   : > { %v936_v57 = vmul.f32 %v1697_v46, %v932_v53  ;;  %v922_v58 = vmul.f32 1.0614054, %v1699_v55  ;;  %v1701_v6 = vpop.eup %1700 }
 0x197   : > { %v1703_v18 = vpop.eup %1702 }
 0x198   : > { %v940_v59 = vadd.f32 -0.28449672, %v936_v57  ;;  %v926_v60 = vadd.f32 -1.4531521, %v922_v58  ;;  %v1585_v57 = vld [vmem:[%s2275_s13 + $0x38] sm:$0xff] }
 0x199   : > { %1178 = vmatpush.bf16.msra.mxu2 %v1585_v57 }
 0x19a   : > { %v944_v62 = vmul.f32 %v1697_v46, %v940_v59  ;;  %v930_v63 = vmul.f32 %v1699_v55, %v926_v60  ;;  %v1689_v60 = vld [vmem:[%s2436_s22] ss:$0 sm:$0xff] }
 0x19c   : > { %v948_v0 = vadd.f32 0.2548296, %v944_v62  ;;  %v934_v1 = vadd.f32 1.4214138, %v930_v63  ;;  %v1584_v63 = vld [vmem:[%s2275_s13 + $0x30] sm:$0xff] }
 0x19d   : > { %1179 = vmatpush.bf16.msra.mxu2 %v1584_v63 }
 0x19e   : > { %v952_v5 = vmul.f32 %v1697_v46, %v948_v0  ;;  %v938_v7 = vmul.f32 %v1699_v55, %v934_v1 }
 0x1a0   : > { %v972_v8 = vmul.f32 %v1701_v6, %v952_v5  ;;  %v942_v9 = vadd.f32 -0.28449672, %v938_v7 }
 0x1a2   : > { %v976_v10 = vsub.f32 1.0, %v972_v8  ;;  %v946_v11 = vmul.f32 %v1699_v55, %v942_v9 }
 0x1a4   : > { %v984_v12 = vsub.f32 0.0, %v976_v10  ;;  %v950_v13 = vadd.f32 0.2548296, %v946_v11 }
 0x1a6   : > { %v988_v14 = vsel %vm980_vm6, %v976_v10, %v984_v12  ;;  %v954_v17 = vmul.f32 %v1699_v55, %v950_v13 }
 0x1a7   : > { %v992_v16 = vadd.f32 1.0, %v988_v14 }
 0x1a8   : > { %v974_v20 = vmul.f32 %v1703_v18, %v954_v17  ;;  %v876_v17 = vpop.f32.mrf.mxu0  ;;  %v783_v18 = vperm.slane %v2333_v33, 0 }
 0x1a9   : > { %v996_v19 = vmul.f32 %v992_v16, %v896_v15  ;;  %v1057_v15 = vld [vmem:[%s2264_s3] sm:$0xf] }
 0x1aa   : > { %v978_v21 = vsub.f32 1.0, %v974_v20  ;;  %v2345_v20 = vadd.f32 %v876_v17, %v783_v18 }
 0x1ab   : > { %1001 = vadd.xlane.f32.xlu2 %v996_v19  ;;  %v1005_v26 = vmul.f32 %v996_v19, %v996_v19 }
 0x1ac   : > { %v986_v22 = vsub.f32 0.0, %v978_v21 }
 0x1ae   : > { %v990_v23 = vsel %vm982_vm7, %v978_v21, %v986_v22  ;;  %v2350_v22 = vmul.f32 0.70710677, %v2345_v20 }
 0x1af   : > { %v994_v25 = vadd.f32 1.0, %v990_v23 }
 0x1b0   : > { %vm979_vm0 = vcmp.ge.f32.partialorder %v2350_v22, 0.0 }
 0x1b1   : > { %v998_v27 = vmul.f32 %v994_v25, %v898_v24  ;;  %v903_v24 = vand.u32 2147483647, %v2350_v22 }
 0x1b3   : > { %1007 = vadd.xlane.f32.xlu2 %v1005_v26  ;;  %1003 = vadd.xlane.f32.xlu0 %v998_v27  ;;  %v1006_v28 = vmul.f32 %v998_v27, %v998_v27  ;;  %v907_v26 = vmul.f32 0.3275911, %v903_v24 }
 0x1b5   : > { %1009 = vadd.xlane.f32.xlu1 %v1006_v28  ;;  %v911_v33 = vadd.f32 1.0, %v907_v26 }
 0x1cb   : > { %1062 = vperm.xlu2 %1685, %v1058_v56   ;;  %v1578_v56 = vld [vmem:[%s2275_s13] sm:$0xff] }
 0x21e   : > { %v1002_v29 = vpop.xlane.xlu2 %1001 }
 0x21f   : > { %v1011_v30 = vmul.f32 0.015625, %v1002_v29 }
 0x221   : > { %v1015_v32 = vmul.f32 %v1011_v30, %v1011_v30  ;;  %v1021_v58 = vsub.f32 %v996_v19, %v1011_v30  ;;  %v878_v19 = vpop.f32.mrf.mxu0 }
 0x222   : > { %v2347_v21 = vadd.f32 %v878_v19, %v783_v18 }
 0x224   : > { %v2353_v23 = vmul.f32 0.70710677, %v2347_v21 }
 0x226   : > { %v1008_v31 = vpop.xlane.xlu2 %1007  ;;  %v1004_v34 = vpop.xlane.xlu0 %1003  ;;  %v905_v25 = vand.u32 2147483647, %v2353_v23  ;;  %vm981_vm1 = vcmp.ge.f32.partialorder %v2353_v23, 0.0 }
 0x227   : > { %v1013_v35 = vmul.f32 0.015625, %v1008_v31  ;;  %v1012_v36 = vmul.f32 0.015625, %v1004_v34  ;;  %v1583_v34 = vld [vmem:[%s2275_s13 + $0x28] sm:$0xff] }
 0x228   : > { %v1010_v38 = vpop.xlane.xlu1 %1009  ;;  %1180 = vmatpush.bf16.msra.mxu2 %v1583_v34 }
 0x229   : > { %v1017_v37 = vsub.f32 %v1013_v35, %v1015_v32  ;;  %v1016_v39 = vmul.f32 %v1012_v36, %v1012_v36  ;;  %v1014_v40 = vmul.f32 0.015625, %v1010_v38  ;;  %v1022_v5 = vsub.f32 %v998_v27, %v1012_v36  ;;  %v1582_v38 = vld [vmem:[%s2275_s13 + $0x20] sm:$0xff] }
 0x22a   : > { %v909_v27 = vmul.f32 0.3275911, %v905_v25 }
 0x22b   : > { %v1019_v41 = vmax.f32 %v1017_v37, 0.0  ;;  %v1018_v42 = vsub.f32 %v1014_v40, %v1016_v39 }
 0x22c   : > { %v913_v28 = vadd.f32 1.0, %v909_v27  ;;  %1181 = vmatpush.bf16.msra.mxu2 %v1582_v38 }
 0x22d   : > { %v1023_v43 = vadd.f32 1e-05, %v1019_v41  ;;  %v1020_v44 = vmax.f32 %v1018_v42, 0.0  ;;  %v1581_v41 = vld [vmem:[%s2275_s13 + $0x18] sm:$0xff] }
 0x22f   : > { %1704 = vrsqrt.f32 %v1023_v43  ;;  %v1024_v45 = vadd.f32 1e-05, %v1020_v44  ;;  %vm1031_vm9 = vweird.f32 %v1023_v43  ;;  %v955_v44 = vsub.f32 0.0, %v903_v24 }
 0x230   : > { %1182 = vmatpush.bf16.msra.mxu2 %v1581_v41 }
 0x231   : > { %1706 = vrsqrt.f32 %v1024_v45  ;;  %vm1041_vm12 = vweird.f32 %v1024_v45 }
 0x232   : > { %1708 = vrcp.f32 %v911_v33  ;;  %v1691_v33 = vld [vmem:[%s693_s16] ss:$0 sm:$0xff] }
 0x233   : > { %1710 = vrcp.f32 %v913_v28 }
 0x235   : > { %v1705_v46 = vpop.eup %1704 }
 0x236   : > { %v1026_v47 = vmul.f32 %v1705_v46, %v1023_v43  ;;  %vm1032_vm8 = vweird.f32 %v1705_v46  ;;  %v1580_v43 = vld [vmem:[%s2275_s13 + $0x10] sm:$0xff] }
 0x237   : > { %v1707_v48 = vpop.eup %1706  ;;  %vm1033_vm10 = vmor %vm1031_vm9, %vm1032_vm8  ;;  %1183 = vmatpush.bf16.msra.mxu2 %v1580_v43 }
 0x238   : > { %v1027_v49 = vmul.f32 %v1705_v46, %v1026_v47  ;;  %v1036_v50 = vmul.f32 %v1707_v48, %v1024_v45  ;;  %vm1042_vm11 = vweird.f32 %v1707_v48  ;;  %v1709_v29 = vpop.eup %1708  ;;  %v957_v47 = vsub.f32 0.0, %v905_v25 }
 0x239   : > { %vm1043_vm13 = vmor %vm1041_vm12, %vm1042_vm11  ;;  %v1711_v30 = vpop.eup %1710  ;;  %v919_v31 = vmul.f32 1.0614054, %v1709_v29 }
 0x23a   : > { %v1028_v51 = vmul.f32 0.5, %v1027_v49  ;;  %v1037_v52 = vmul.f32 %v1707_v48, %v1036_v50  ;;  %v921_v32 = vmul.f32 1.0614054, %v1711_v30 }
 0x23b   : > { %v923_v35 = vadd.f32 -1.4531521, %v919_v31 }
 0x23c   : > { %v1029_v53 = vsub.f32 1.5, %v1028_v51  ;;  %v1038_v54 = vmul.f32 0.5, %v1037_v52  ;;  %v925_v36 = vadd.f32 -1.4531521, %v921_v32  ;;  %v1579_v51 = vld [vmem:[%s2275_s13 + $0x8] sm:$0xff]  ;;  %v961_v52 = vmul.f32 %v957_v47, %v905_v25 }
 0x23d   : > { %v927_v37 = vmul.f32 %v1709_v29, %v923_v35  ;;  %1184 = vmatpush.bf16.msra.mxu2 %v1579_v51 }
 0x23e   : > { %v1030_v55 = vmul.f32 %v1705_v46, %v1029_v53  ;;  %v1039_v59 = vsub.f32 1.5, %v1038_v54  ;;  %v929_v39 = vmul.f32 %v1711_v30, %v925_v36  ;;  %v967_v57 = vmul.f32 1.442695, %v961_v52 }
 0x23f   : > { %v931_v40 = vadd.f32 1.4214138, %v927_v37 }
 0x240   : > { %v1034_v62 = vsel %vm1033_vm10, %v1705_v46, %v1030_v55  ;;  %v1040_v0 = vmul.f32 %v1707_v48, %v1039_v59  ;;  %v933_v42 = vadd.f32 1.4214138, %v929_v39 }
 0x241   : > { %v1045_v1 = vmul.f32 %v1034_v62, %v1021_v58  ;;  %v935_v45 = vmul.f32 %v1709_v29, %v931_v40  ;;  %1185 = vmatpush.bf16.msra.mxu2 %v1578_v56 }
 0x242   : > { %v1044_v7 = vsel %vm1043_vm13, %v1707_v48, %v1040_v0  ;;  %v937_v46 = vmul.f32 %v1711_v30, %v933_v42  ;;  %v959_v48 = vmul.f32 %v955_v44, %v903_v24 }
 0x243   : > { %v1050_v6 = vmul.f32 %v1689_v60, %v1045_v1  ;;  %v1046_v8 = vmul.f32 %v1044_v7, %v1022_v5  ;;  %v939_v49 = vadd.f32 -0.28449672, %v935_v45 }
 0x244   : > { %v941_v50 = vadd.f32 -0.28449672, %v937_v46  ;;  %v963_v53 = vmul.f32 1.442695, %v959_v48 }
 0x245   : > { %v1055_v9 = vadd.f32 %v1690_v3, %v1050_v6  ;;  %v1051_v10 = vmul.f32 %v1689_v60, %v1046_v8  ;;  %v943_v54 = vmul.f32 %v1709_v29, %v939_v49 }
 0x246   : > { %v945_v55 = vmul.f32 %v1711_v30, %v941_v50  ;;  %1712 = vpow2.f32 %v963_v53 }
 0x247   : > { %v1059_v11 = vpack.c.bf16 %v1055_v9, %v1055_v9  ;;  %v1056_v12 = vadd.f32 %v1690_v3, %v1051_v10  ;;  %v947_v58 = vadd.f32 0.2548296, %v943_v54  ;;  %1714 = vpow2.f32 %v967_v57 }
 0x248   : > { %v949_v59 = vadd.f32 0.2548296, %v945_v55 }
 0x249   : > { %v1071_v13 = vsel %vm1069_vm14, %v1059_v11, 0  ;;  %v1087_v14 = vpack.c.bf16 %v1056_v12, %v1056_v12  ;;  %v951_v60 = vmul.f32 %v1709_v29, %v947_v58  ;;  %v1063_v12 = vpop.permute.xlu2 %1062 }
 0x24a   : > { %1080 = vmatpush.bf16.msra.mxu3 %v1071_v13  ;;  %v953_v61 = vmul.f32 %v1711_v30, %v949_v59 }
 0x24b   : > { %v1089_v16 = vsel %vm1069_vm14, %v1087_v14, 0 }
 0x24c   : > { %v1713_v62 = vpop.eup %1712 }
 0x24d   : > { %1521 = vmatmul.msk.bf16.vlgmr.msra.gmra.mxu3 %vm1065_vm15, %v1057_v15  ;;  %v1715_v63 = vpop.eup %1714  ;;  %v971_v0 = vmul.f32 %v1713_v62, %v951_v60 }
 0x24e   : > { %1098 = vmatpush.bf16.msrb.mxu3 %v1089_v16  ;;  %v973_v1 = vmul.f32 %v1715_v63, %v953_v61  ;;  %v897_v16 = vmul.f32 0.5, %v2347_v21 }
 0x24f   : > { %v975_v5 = vsub.f32 1.0, %v971_v0 }
 0x250   : > { %v977_v6 = vsub.f32 1.0, %v973_v1 }
 0x251   : > { %v983_v7 = vsub.f32 0.0, %v975_v5 }
 0x252   : > { %v985_v8 = vsub.f32 0.0, %v977_v6 }
 0x253   : > { %v987_v10 = vsel %vm979_vm0, %v975_v5, %v983_v7 }
 0x254   : > { %v989_v11 = vsel %vm981_vm1, %v977_v6, %v985_v8  ;;  %v991_v13 = vadd.f32 1.0, %v987_v10 }
 0x255   : > { %v993_v14 = vadd.f32 1.0, %v989_v11 }
 0x257   : > { %v997_v24 = vmul.f32 %v993_v14, %v897_v16 }
 0x25d   : > { %1522 = vmatmul.msk.bf16.vlgmr.msrb.gmra.mxu3 %vm1065_vm15, %v1057_v15  ;;  %v895_v15 = vmul.f32 0.5, %v2345_v20 }
 0x25f   : > { %v995_v19 = vmul.f32 %v991_v13, %v895_v15 }
 0x2d0   : > { %v1082_v3 = vpop.f32.mrf.mxu3 }
 0x2d1   : > { %v1083_v17 = vadd.f32 %v1082_v3, %v1063_v12 }
 0x2d3   : > { %v1107_v26 = vmul.f32 %v1083_v17, %v995_v19 }
 0x2d8   : > { %v1084_v9 = vpop.f32.mrf.mxu3 }
 0x2e0   : > { %v1100_v18 = vpop.f32.mrf.mxu3 }
 0x2e1   : > { %v1101_v25 = vadd.f32 %v1100_v18, %v1063_v12 }
 0x2e3   : > { %v1108_v27 = vmul.f32 %v1101_v25, %v997_v24 }
 0x2e5   : > { %v1109_v22 = vpack.c.bf16 %v1108_v27, %v1107_v26 }
 0x2e7   : > { %1186 = vmatmul.bf16.vlgmr.msra.gmra.mxu2 %v1109_v22 }
 0x2e8   : > { %v1102_v23 = vpop.f32.mrf.mxu3 }
 0x36a   : > { %v1187_v28 = vpop.f32.mrf.mxu2 }
 0x36b   : > { %v1188_v29 = vadd.f32 %v1691_v33, %v1187_v28 }
 0x36d   : > { %v1192_v20 = vadd.f32 %v1188_v29, %v2284_v2 }
 0x36f   : > { %1194 = vst [vmem:[#allocation2] sm:$0xff] %v1192_v20 }
 0x372   : > { %v1189_v21 = vpop.f32.mrf.mxu2 }
 0x373   : > { %v1190_v30 = vadd.f32 %v1691_v33, %v1189_v21  ;;  %1199 = sbr.rel (%p1555_p1) target bundleno = 890 (0x37a), region = 100 }
 0x375   : > { %v1193_v31 = vadd.f32 %v1190_v30, %v2289_v4 }
 0x377   : > { %1195 = vst [vmem:[#allocation2 + $0x8] sm:$0xff] %v1193_v31 }
 0x378   : > { %1200 = vst [vmem:[#allocation16] sm:$0xff] %v1192_v20 }
 0x379   : > { %1201 = vst [vmem:[#allocation16 + $0x8] sm:$0xff] %v1193_v31 }
 0x37a PF: > { %p1627_p2 = scmp.eq.s32.totalorder %s2119_s23, 1  ;;  %s2438_s1 = sld [smem:[#allocation31_spill]] }
 0x37b   : > { %s2027_s28 = smov [#allocation16]   ;;  %s2028_s26 = smov 128  }
 0x37c   : > { %s1210_s19 = sshll.u32 %s2027_s28, 4  ;;  %s2029_s3 = smov 8   ;;  %s1211_s19 = int_to_ptr.vmem [resolvable:$true] %s1210_s19 }
 0x380   : > { %s1212_s24 = sshll.u32 %s2438_s1, 4  ;;  %s1213_s24 = int_to_ptr.hbm [resolvable:$true] %s1212_s24 }
 0x381   : > { %1601 = dma.vmem_to_hbm [thread:$0]  (%p1627_p2), %s1211_s19, 256, %s1213_s24, [#allocation6], %s2028_s26, %s2028_s26, %s2029_s3  }
 0x382   : > { %1995 = dma.done.wait (%p1627_p2), [#allocation6], 256  }
 0x383   : > { %1997 = vsyncadd (%p1627_p2), [#allocation6], 4294967040 }
 0x384 PF: > { %s2439_s20 = sld [smem:[#allocation23_spill]]  ;;  %s2443_s17 = smov %s2004_s18 }
 0x385   : > { %s2440_s30 = sld [smem:[#allocation22_spill]] }
 0x386   : > { %s2441_s19 = sld [smem:[#allocation25_spill]] }
 0x387   : > { %s2442_s23 = sld [smem:[#allocation24_spill]] }
 0x38a   : > { %s34_s22 = sadd.s32 1, %s2439_s20   ;;  %s2445_s20 = smov %s2016_s21 }
 0x38b   : > { %p31_p3 = scmp.ge.s32.totalorder %s34_s22, 4   ;;  %s2444_s18 = smov %s2440_s30 }
 0x38d   : > { %s2446_s21 = smov %s2442_s23  ;;  %33 = sbr.rel (!%p31_p3) target bundleno = 18 (0x12), region = 194 }
 0x392   :  { %1229 = vsyncpa [#allocation5], 1 }
 0x393   :  { %1231 = vsyncpa [#allocation5 + $0x1], 1 }
 0x394   :  { %1232 = vsyncpa [#allocation8], 1 }
 0x395   :  { %1234 = vsyncpa [#allocation8 + $0x1], 1 }
 0x396   :  { %1235 = vsyncpa [#allocation11], 1 }
 0x397   :  { %1237 = vsyncpa [#allocation11 + $0x1], 1 }
 0x398   :  { %1238 = vsyncpa [#allocation14], 1 }
 0x399   :  { %1240 = vsyncpa [#allocation14 + $0x1], 1 }
 0x39a   :  { %1241 = vsyncpa [#allocation6], 1 }
 0x39b   :  { %1243 = vsyncpa [#allocation6 + $0x1], 1 }

</bundles_post_ra>
